<compile_context>
chip_gen: v7x
topology: tpu7x:2x2x1
jax: 0.10.0
libtpu: 0.0.40
codegen_flags: <defaults>
</compile_context>

<pallas_src>
import jax
import jax.numpy as jnp
from jax.experimental import pallas as pl
from jax.experimental.pallas import tpu as pltpu

EPS = 1e-6
HEAD_PAD = 128  # lane-dense head output width: col 0 = reg, cols 1:3 = cls, rest zero


# ----------------------------- fused Pallas kernel -----------------------------

def _make_fused_kernel(c_in, hw, p_is_3, use_mxu_stem):
    inv_hw = 1.0 / float(hw)

    def kernel(x_ref, w_ref, b_ref, age_ref, p_ref,
               wh_ref, wah_ref, bh_ref, out_ref, acc_ref):
        # grid = (batch, hw_tile); hw_tile is the reduction ("arbitrary") axis
        h = pl.program_id(1)

        @pl.when(h == 0)
        def _init():
            acc_ref[...] = jnp.zeros_like(acc_ref)

        x = x_ref[0]          # (t_hw, c_in)  f32
        w = w_ref[...]        # (c_in, c_feat)
        if use_mxu_stem:
            # large K: feed the MXU bf16 operands, accumulate in f32
            y = jnp.dot(x.astype(jnp.bfloat16), w.astype(jnp.bfloat16),
                        preferred_element_type=jnp.float32) + b_ref[...]
        else:
            # tiny K: a padded MXU matmul is ~all padding -> VPU broadcast mul-adds
            y = b_ref[...] + x[:, 0:1] * w[0:1, :]
            for k in range(1, c_in):
                y = y + x[:, k:k + 1] * w[k:k + 1, :]
        feat = y * jax.nn.sigmoid(y)              # swish (kept in f32)

        # GeM accumulation: sum over this HW tile of clamp(feat, eps)^p
        z = jnp.maximum(feat, EPS)
        p = p_ref[0, 0]
        if p_is_3:
            zp = z * z * z                        # exact integer power, VPU only
        else:
            zp = jnp.exp(p * jnp.log(z))          # generic pow (EUP transcendentals)
        acc_ref[...] += jnp.sum(zp, axis=0, keepdims=True)

        @pl.when(h == pl.num_programs(1) - 1)
        def _finalize():
            pooled = acc_ref[...] * inv_hw                      # mean over H*W -> (1, c_feat)
            pooled = jnp.power(pooled, 1.0 / p)                 # ^(1/p), tiny tensor
            # single merged head matmul, lane-dense (1, HEAD_PAD) store
            head = jnp.dot(pooled, wh_ref[...],
                           preferred_element_type=jnp.float32)
            out_ref[0] = head + age_ref[0] * wah_ref[...] + bh_ref[...]

    return kernel


def _pick_hw_tile(hw):
    # largest multiple-of-8 divisor of HW, capped at 512 rows
    for t in (512, 256, 128, 64, 32, 16, 8):
        if hw % t == 0:
            return t
    return hw


# --------------------------------- wrapper --------------------------------------

def enetv2_forward(x_nchw, age, params, hw_tile=None):
    B, C_in, H, W = x_nchw.shape
    HW = H * W
    C_feat = params["w_stem"].shape[1]

    # NCHW -> NHWC -> (B, HW, C_in): channels land on the 128-lane axis
    x = jnp.transpose(x_nchw, (0, 2, 3, 1)).reshape(B, HW, C_in).astype(jnp.float32)

    t_hw = _pick_hw_tile(HW) if hw_tile is None else int(hw_tile)
    assert HW % t_hw == 0, "HW must be divisible by the HW tile"
    n_hw = HW // t_hw

    # merge both heads into one lane-padded weight: col 0 = reg, cols 1:3 = cls
    w_head = jnp.zeros((C_feat, HEAD_PAD), jnp.float32)
    w_head = w_head.at[:, 0:1].set(params["w_reg"]).at[:, 1:3].set(params["w_cls"])
    wa_head = jnp.zeros((1, HEAD_PAD), jnp.float32)
    wa_head = wa_head.at[:, 0:1].set(params["wa_reg"]).at[:, 1:3].set(params["wa_cls"])
    b_head = jnp.zeros((1, HEAD_PAD), jnp.float32)
    b_head = b_head.at[:, 0:1].set(params["b_reg"]).at[:, 1:3].set(params["b_cls"])

    age3 = age.reshape(B, 1, 1).astype(jnp.float32)
    p = params["p"].reshape(1, 1).astype(jnp.float32)

    # specialise pow(x, 3) -> x*x*x only when the learnable p really is 3
    try:
        p_is_3 = bool(abs(float(params["p"].reshape(-1)[0]) - 3.0) < 1e-6)
    except Exception:  # traced under jit -> keep the generic (always-correct) path
        p_is_3 = False

    kernel = _make_fused_kernel(C_in, HW, p_is_3, use_mxu_stem=(C_in >= 128))

    out = pl.pallas_call(
        kernel,
        out_shape=jax.ShapeDtypeStruct((B, 1, HEAD_PAD), jnp.float32),
        grid_spec=pltpu.PrefetchScalarGridSpec(
            num_scalar_prefetch=0,
            grid=(B, n_hw),
            in_specs=[
                pl.BlockSpec((1, t_hw, C_in), lambda b, h: (b, h, 0)),    # x tile
                pl.BlockSpec((C_in, C_feat), lambda b, h: (0, 0)),        # w_stem
                pl.BlockSpec((1, C_feat), lambda b, h: (0, 0)),           # b_stem
                pl.BlockSpec((1, 1, 1), lambda b, h: (b, 0, 0)),          # age (per batch)
                pl.BlockSpec((1, 1), lambda b, h: (0, 0)),                # p
                pl.BlockSpec((C_feat, HEAD_PAD), lambda b, h: (0, 0)),    # merged head W
                pl.BlockSpec((1, HEAD_PAD), lambda b, h: (0, 0)),         # merged age W
                pl.BlockSpec((1, HEAD_PAD), lambda b, h: (0, 0)),         # merged bias
            ],
            out_specs=pl.BlockSpec((1, 1, HEAD_PAD), lambda b, h: (b, 0, 0)),
            scratch_shapes=[pltpu.VMEM((1, C_feat), jnp.float32)],        # GeM accumulator
        ),
        compiler_params=pltpu.CompilerParams(
            dimension_semantics=("parallel", "arbitrary")),
    )(x, params["w_stem"], params["b_stem"], age3, p, w_head, wa_head, b_head)

    out = out.reshape(B, HEAD_PAD)
    return out[:, 0:1], out[:, 1:3]


# ------------------------------ pure-JAX reference -------------------------------

def ref_forward(x_nchw, age, params):
    B, C_in, H, W = x_nchw.shape
    x = jnp.transpose(x_nchw, (0, 2, 3, 1)).reshape(B, H * W, C_in).astype(jnp.float32)
    y = jnp.dot(x, params["w_stem"], precision=jax.lax.Precision.HIGHEST) + params["b_stem"]
    feat = y * jax.nn.sigmoid(y)
    p = params["p"].reshape(())
    pooled = jnp.mean(jnp.maximum(feat, EPS) ** p, axis=1) ** (1.0 / p)
    cat = jnp.concatenate([pooled, age.reshape(B, 1).astype(jnp.float32)], axis=1)
    w_reg_full = jnp.concatenate([params["w_reg"], params["wa_reg"]], axis=0)
    w_cls_full = jnp.concatenate([params["w_cls"], params["wa_cls"]], axis=0)
    x_reg = jnp.dot(cat, w_reg_full, precision=jax.lax.Precision.HIGHEST) + params["b_reg"]
    x_cls = jnp.dot(cat, w_cls_full, precision=jax.lax.Precision.HIGHEST) + params["b_cls"]
    return x_reg, x_cls


def init_params(key, c_in, c_feat):
    ks = jax.random.split(key, 8)
    return {
        # stand-in backbone (pointwise conv)
        "w_stem": 0.1 * jax.random.normal(ks[0], (c_in, c_feat), jnp.float32),
        "b_stem": 0.1 * jax.random.normal(ks[1], (1, c_feat), jnp.float32),
        # GeM: p = Parameter(torch.ones(1) * 3)
        "p": jnp.full((1, 1), 3.0, jnp.float32),
        # myfc: Linear(c_feat + 1, 1) split into [feature part, age column]
        "w_reg": 0.05 * jax.random.normal(ks[2], (c_feat, 1), jnp.float32),
        "wa_reg": 0.05 * jax.random.normal(ks[3], (1, 1), jnp.float32),
        "b_reg": 0.05 * jax.random.normal(ks[4], (1, 1), jnp.float32),
        # fc: Linear(c_feat + 1, 2) split into [feature part, age column]
        "w_cls": 0.05 * jax.random.normal(ks[5], (c_feat, 2), jnp.float32),
        "wa_cls": 0.05 * jax.random.normal(ks[6], (1, 2), jnp.float32),
        "b_cls": 0.05 * jax.random.normal(ks[7], (1, 2), jnp.float32),
    }


if __name__ == "__main__":
    key = jax.random.PRNGKey(0)
    k_x, k_age, k_p = jax.random.split(key, 3)

    B, C_IN, H, W = 2, 4, 16, 16
    C_FEAT = 128   # lane-aligned stand-in width (real EfficientNet-b2: 1408 = 11*128)

    x = jax.random.normal(k_x, (B, C_IN, H, W), jnp.float32)
    age = jax.random.uniform(k_age, (B,), jnp.float32, minval=20.0, maxval=80.0)
    params = init_params(k_p, C_IN, C_FEAT)

    # hw_tile=64 forces a 4-step HW reduction so the fused accumulator path is exercised
    x_reg, x_cls = enetv2_forward(x, age, params, hw_tile=64)
    jax.block_until_ready((x_reg, x_cls))

    r_reg, r_cls = ref_forward(x, age, params)
    assert x_reg.shape == (B, 1) and x_cls.shape == (B, 2)
    assert jnp.allclose(x_reg, r_reg, rtol=1e-3, atol=1e-3)
    assert jnp.allclose(x_cls, r_cls, rtol=1e-3, atol=1e-3)

    print("KERNEL_OK")
</pallas_src>

<mosaic_0001>
module attributes {stable_mosaic.version = 11 : i64} {
  func.func @kernel(%arg0: i32, %arg1: i32, %arg2: memref<1x64x4xf32, #tpu.memory_space<vmem>>, %arg3: memref<4x128xf32, #tpu.memory_space<vmem>>, %arg4: memref<1x128xf32, #tpu.memory_space<vmem>>, %arg5: memref<1x1x1xf32, #tpu.memory_space<vmem>>, %arg6: memref<1x1xf32, #tpu.memory_space<vmem>>, %arg7: memref<128x128xf32, #tpu.memory_space<vmem>>, %arg8: memref<1x128xf32, #tpu.memory_space<vmem>>, %arg9: memref<1x128xf32, #tpu.memory_space<vmem>>, %arg10: memref<1x1x128xf32, #tpu.memory_space<vmem>>, %arg11: memref<1x128xf32, #tpu.memory_space<vmem>>) attributes {dimension_semantics = [#tpu.dimension_semantics<parallel>, #tpu.dimension_semantics<arbitrary>], iteration_bounds = array<i64: 2, 4>, scalar_prefetch = 0 : i64, scratch_operands = 1 : i64, tpu.core_type = #tpu.core_type<tc>, window_params = [{transform_indices = @transform_0, window_bounds = array<i64: 1, 64, 4>}, {pipeline_mode = #tpu.pipeline_mode<synchronous>, transform_indices = @transform_1, window_bounds = array<i64: 4, 128>}, {pipeline_mode = #tpu.pipeline_mode<synchronous>, transform_indices = @transform_2, window_bounds = array<i64: 1, 128>}, {transform_indices = @transform_3, window_bounds = array<i64: 1, 1, 1>}, {pipeline_mode = #tpu.pipeline_mode<synchronous>, transform_indices = @transform_4, window_bounds = array<i64: 1, 1>}, {pipeline_mode = #tpu.pipeline_mode<synchronous>, transform_indices = @transform_5, window_bounds = array<i64: 128, 128>}, {pipeline_mode = #tpu.pipeline_mode<synchronous>, transform_indices = @transform_6, window_bounds = array<i64: 1, 128>}, {pipeline_mode = #tpu.pipeline_mode<synchronous>, transform_indices = @transform_7, window_bounds = array<i64: 1, 128>}, {transform_indices = @transform_8, window_bounds = array<i64: 1, 1, 128>}]} {
    %c0_i32 = arith.constant 0 : i32
    %0 = arith.cmpi eq, %arg1, %c0_i32 : i32
    %1 = arith.extui %0 : i1 to i32
    %c0_i32_0 = arith.constant 0 : i32
    %2 = arith.cmpi ne, %1, %c0_i32_0 : i32
    scf.if %2 {
      %cst_16 = arith.constant 0.000000e+00 : f32
      %52 = vector.broadcast %cst_16 : f32 to vector<1x128xf32>
      %c0_17 = arith.constant 0 : index
      %c0_18 = arith.constant 0 : index
      %53 = vector.load %arg11[%c0_17, %c0_18] : memref<1x128xf32, #tpu.memory_space<vmem>>, vector<1x128xf32>
      tpu.vector_store %arg11[%c0_17, %c0_18], %52 {strides = array<i32>} : memref<1x128xf32, #tpu.memory_space<vmem>>, vector<1x128xf32>,
    } else {
    }
    %c0 = arith.constant 0 : index
    %c0_1 = arith.constant 0 : index
    %c0_2 = arith.constant 0 : index
    %3 = vector.load %arg2[%c0, %c0_1, %c0_2] : memref<1x64x4xf32, #tpu.memory_space<vmem>>, vector<1x64x4xf32>
    %4 = vector.shape_cast %3 : vector<1x64x4xf32> to vector<64x4xf32>
    %c0_3 = arith.constant 0 : index
    %c0_4 = arith.constant 0 : index
    %5 = vector.load %arg3[%c0_3, %c0_4] : memref<4x128xf32, #tpu.memory_space<vmem>>, vector<4x128xf32>
    %c0_5 = arith.constant 0 : index
    %c0_6 = arith.constant 0 : index
    %6 = vector.load %arg4[%c0_5, %c0_6] : memref<1x128xf32, #tpu.memory_space<vmem>>, vector<1x128xf32>
    %7 = vector.extract_strided_slice %4 {offsets = [0, 0], sizes = [64, 1], strides = [1, 1]} : vector<64x4xf32> to vector<64x1xf32>
    %8 = vector.extract_strided_slice %5 {offsets = [0, 0], sizes = [1, 128], strides = [1, 1]} : vector<4x128xf32> to vector<1x128xf32>
    %9 = vector.broadcast %7 : vector<64x1xf32> to vector<64x128xf32>
    %10 = vector.broadcast %8 : vector<1x128xf32> to vector<64x128xf32>
    %11 = arith.mulf %9, %10 : vector<64x128xf32>
    %12 = vector.broadcast %6 : vector<1x128xf32> to vector<64x128xf32>
    %13 = arith.addf %12, %11 : vector<64x128xf32>
    %14 = vector.extract_strided_slice %4 {offsets = [0, 1], sizes = [64, 1], strides = [1, 1]} : vector<64x4xf32> to vector<64x1xf32>
    %15 = vector.extract_strided_slice %5 {offsets = [1, 0], sizes = [1, 128], strides = [1, 1]} : vector<4x128xf32> to vector<1x128xf32>
    %16 = vector.broadcast %14 : vector<64x1xf32> to vector<64x128xf32>
    %17 = vector.broadcast %15 : vector<1x128xf32> to vector<64x128xf32>
    %18 = arith.mulf %16, %17 : vector<64x128xf32>
    %19 = arith.addf %13, %18 : vector<64x128xf32>
    %20 = vector.extract_strided_slice %4 {offsets = [0, 2], sizes = [64, 1], strides = [1, 1]} : vector<64x4xf32> to vector<64x1xf32>
    %21 = vector.extract_strided_slice %5 {offsets = [2, 0], sizes = [1, 128], strides = [1, 1]} : vector<4x128xf32> to vector<1x128xf32>
    %22 = vector.broadcast %20 : vector<64x1xf32> to vector<64x128xf32>
    %23 = vector.broadcast %21 : vector<1x128xf32> to vector<64x128xf32>
    %24 = arith.mulf %22, %23 : vector<64x128xf32>
    %25 = arith.addf %19, %24 : vector<64x128xf32>
    %26 = vector.extract_strided_slice %4 {offsets = [0, 3], sizes = [64, 1], strides = [1, 1]} : vector<64x4xf32> to vector<64x1xf32>
    %27 = vector.extract_strided_slice %5 {offsets = [3, 0], sizes = [1, 128], strides = [1, 1]} : vector<4x128xf32> to vector<1x128xf32>
    %28 = vector.broadcast %26 : vector<64x1xf32> to vector<64x128xf32>
    %29 = vector.broadcast %27 : vector<1x128xf32> to vector<64x128xf32>
    %30 = arith.mulf %28, %29 : vector<64x128xf32>
    %31 = arith.addf %25, %30 : vector<64x128xf32>
    %32 = arith.negf %31 : vector<64x128xf32>
    %33 = math.exp %32 : vector<64x128xf32>
    %cst = arith.constant 1.000000e+00 : f32
    %34 = vector.broadcast %cst : f32 to vector<64x128xf32>
    %35 = arith.addf %34, %33 : vector<64x128xf32>
    %36 = arith.divf %34, %35 : vector<64x128xf32>
    %37 = arith.mulf %31, %36 : vector<64x128xf32>
    %cst_7 = arith.constant 9.99999997E-7 : f32
    %38 = vector.broadcast %cst_7 : f32 to vector<64x128xf32>
    %39 = arith.maximumf %37, %38 : vector<64x128xf32>
    %c0_8 = arith.constant 0 : index
    %c0_9 = arith.constant 0 : index
    %40 = vector.load %arg6[%c0_8, %c0_9] : memref<1x1xf32, #tpu.memory_space<vmem>>, vector<1x1xf32>
    %41 = vector.extract %40[0, 0] : f32 from vector<1x1xf32>
    %42 = arith.mulf %39, %39 : vector<64x128xf32>
    %43 = arith.mulf %42, %39 : vector<64x128xf32>
    %c0_10 = arith.constant 0 : index
    %c0_11 = arith.constant 0 : index
    %44 = vector.load %arg11[%c0_10, %c0_11] : memref<1x128xf32, #tpu.memory_space<vmem>>, vector<1x128xf32>
    %cst_12 = arith.constant dense<0.000000e+00> : vector<128xf32>
    %45 = vector.multi_reduction <add>, %43, %cst_12 [0] : vector<64x128xf32> to vector<128xf32>
    %46 = vector.shape_cast %45 : vector<128xf32> to vector<1x128xf32>
    %47 = arith.addf %44, %46 : vector<1x128xf32>
    %c0_13 = arith.constant 0 : index
    %c0_14 = arith.constant 0 : index
    %48 = vector.load %arg11[%c0_13, %c0_14] : memref<1x128xf32, #tpu.memory_space<vmem>>, vector<1x128xf32>
    tpu.vector_store %arg11[%c0_13, %c0_14], %47 {strides = array<i32>} : memref<1x128xf32, #tpu.memory_space<vmem>>, vector<1x128xf32>,
    %c3_i32 = arith.constant 3 : i32
    %49 = arith.cmpi eq, %arg1, %c3_i32 : i32
    %50 = arith.extui %49 : i1 to i32
    %c0_i32_15 = arith.constant 0 : i32
    %51 = arith.cmpi ne, %50, %c0_i32_15 : i32
    scf.if %51 {
      %c0_16 = arith.constant 0 : index
      %c0_17 = arith.constant 0 : index
      %52 = vector.load %arg11[%c0_16, %c0_17] : memref<1x128xf32, #tpu.memory_space<vmem>>, vector<1x128xf32>
      %cst_18 = arith.constant 3.906250e-03 : f32
      %53 = vector.broadcast %cst_18 : f32 to vector<1x128xf32>
      %54 = arith.mulf %52, %53 : vector<1x128xf32>
      %cst_19 = arith.constant 1.000000e+00 : f32
      %55 = arith.divf %cst_19, %41 : f32
      %56 = vector.broadcast %55 : f32 to vector<1x128xf32>
      %57 = math.powf %54, %56 : vector<1x128xf32>
      %c0_20 = arith.constant 0 : index
      %c0_21 = arith.constant 0 : index
      %58 = vector.load %arg7[%c0_20, %c0_21] : memref<128x128xf32, #tpu.memory_space<vmem>>, vector<128x128xf32>
      %cst_22 = arith.constant dense<0.000000e+00> : vector<1x128xf32>
      %59 = tpu.matmul %57, %58, %cst_22 {dimension_numbers = #tpu.dot_dimension_numbers<[1], [0], [0], [1], [0, 0, 1, 1], [], []>} : vector<1x128xf32>, vector<128x128xf32>, vector<1x128xf32> -> vector<1x128xf32>
      %c0_23 = arith.constant 0 : index
      %c0_24 = arith.constant 0 : index
      %c0_25 = arith.constant 0 : index
      %60 = vector.load %arg5[%c0_23, %c0_24, %c0_25] : memref<1x1x1xf32, #tpu.memory_space<vmem>>, vector<1x1x1xf32>
      %61 = vector.shape_cast %60 : vector<1x1x1xf32> to vector<1x1xf32>
      %c0_26 = arith.constant 0 : index
      %c0_27 = arith.constant 0 : index
      %62 = vector.load %arg8[%c0_26, %c0_27] : memref<1x128xf32, #tpu.memory_space<vmem>>, vector<1x128xf32>
      %63 = vector.broadcast %61 : vector<1x1xf32> to vector<1x128xf32>
      %64 = arith.mulf %63, %62 : vector<1x128xf32>
      %65 = arith.addf %59, %64 : vector<1x128xf32>
      %c0_28 = arith.constant 0 : index
      %c0_29 = arith.constant 0 : index
      %66 = vector.load %arg9[%c0_28, %c0_29] : memref<1x128xf32, #tpu.memory_space<vmem>>, vector<1x128xf32>
      %67 = arith.addf %65, %66 : vector<1x128xf32>
      %c0_30 = arith.constant 0 : index
      %c0_31 = arith.constant 0 : index
      %c0_32 = arith.constant 0 : index
      %68 = vector.load %arg10[%c0_30, %c0_31, %c0_32] : memref<1x1x128xf32, #tpu.memory_space<vmem>>, vector<1x1x128xf32>
      %69 = vector.shape_cast %68 : vector<1x1x128xf32> to vector<1x128xf32>
      %70 = vector.shape_cast %67 : vector<1x128xf32> to vector<1x1x128xf32>
      tpu.vector_store %arg10[%c0_30, %c0_31, %c0_32], %70 {strides = array<i32>} : memref<1x1x128xf32, #tpu.memory_space<vmem>>, vector<1x1x128xf32>,
    } else {
    }
    return
  }
  func.func @transform_0(%arg0: i32, %arg1: i32) -> (i32, i32, i32) {
    %c0_i32 = arith.constant 0 : i32
    %c0_i32_0 = arith.constant 0 : i32
    return %arg0, %arg1, %c0_i32 : i32, i32, i32
  }
  func.func @transform_1(%arg0: i32, %arg1: i32) -> (i32, i32) {
    %c0_i32 = arith.constant 0 : i32
    %c0_i32_0 = arith.constant 0 : i32
    %c0_i32_1 = arith.constant 0 : i32
    return %c0_i32, %c0_i32_0 : i32, i32
  }
  func.func @transform_2(%arg0: i32, %arg1: i32) -> (i32, i32) {
    %c0_i32 = arith.constant 0 : i32
    %c0_i32_0 = arith.constant 0 : i32
    %c0_i32_1 = arith.constant 0 : i32
    return %c0_i32, %c0_i32_0 : i32, i32
  }
  func.func @transform_3(%arg0: i32, %arg1: i32) -> (i32, i32, i32) {
    %c0_i32 = arith.constant 0 : i32
    %c0_i32_0 = arith.constant 0 : i32
    %c0_i32_1 = arith.constant 0 : i32
    return %arg0, %c0_i32, %c0_i32_0 : i32, i32, i32
  }
  func.func @transform_4(%arg0: i32, %arg1: i32) -> (i32, i32) {
    %c0_i32 = arith.constant 0 : i32
    %c0_i32_0 = arith.constant 0 : i32
    %c0_i32_1 = arith.constant 0 : i32
    return %c0_i32, %c0_i32_0 : i32, i32
  }
  func.func @transform_5(%arg0: i32, %arg1: i32) -> (i32, i32) {
    %c0_i32 = arith.constant 0 : i32
    %c0_i32_0 = arith.constant 0 : i32
    %c0_i32_1 = arith.constant 0 : i32
    return %c0_i32, %c0_i32_0 : i32, i32
  }
  func.func @transform_6(%arg0: i32, %arg1: i32) -> (i32, i32) {
    %c0_i32 = arith.constant 0 : i32
    %c0_i32_0 = arith.constant 0 : i32
    %c0_i32_1 = arith.constant 0 : i32
    return %c0_i32, %c0_i32_0 : i32, i32
  }
  func.func @transform_7(%arg0: i32, %arg1: i32) -> (i32, i32) {
    %c0_i32 = arith.constant 0 : i32
    %c0_i32_0 = arith.constant 0 : i32
    %c0_i32_1 = arith.constant 0 : i32
    return %c0_i32, %c0_i32_0 : i32, i32
  }
  func.func @transform_8(%arg0: i32, %arg1: i32) -> (i32, i32, i32) {
    %c0_i32 = arith.constant 0 : i32
    %c0_i32_0 = arith.constant 0 : i32
    %c0_i32_1 = arith.constant 0 : i32
    return %arg0, %c0_i32, %c0_i32_0 : i32, i32, i32
  }
}

</mosaic_0001>

<bundles_post_ra>
// kernel: tpu_custom_call.1
= control target key start
LH: loop header
LB: loop body
LE: loop exit
PB: predicated region body
PF: predicated region fallthrough
CT: control target
= control target key end

     0   :  { %s1677_s0 = inlined_call_operand.vmem [shape: f32[2,256,4], index: 0, kind: input, shape index: {}]   ;;  %s1678_s1 = inlined_call_operand.vmem [shape: f32[4,128], index: 1, kind: input, shape index: {}]   ;;  %s1679_s2 = inlined_call_operand.vmem [shape: f32[1,128], index: 2, kind: input, shape index: {}]   ;;  %s1680_s3 = inlined_call_operand.vmem [shape: f32[2,1,1], index: 3, kind: input, shape index: {}]   ;;  %s1681_s4 = inlined_call_operand.<no memory space> [shape: f32[1,1], index: 4, kind: input, shape index: {}]   ;;  %s1682_s5 = inlined_call_operand.vmem [shape: f32[128,128], index: 5, kind: input, shape index: {}]   ;;  %s1683_s6 = inlined_call_operand.vmem [shape: f32[1,128], index: 6, kind: input, shape index: {}]   ;;  %s1684_s7 = inlined_call_operand.vmem [shape: f32[1,128], index: 7, kind: input, shape index: {}]   ;;  %s1685_s8 = inlined_call_operand.hbm [shape: f32[2,1,128], index: 8, kind: output, shape index: {}]  }
   0x1   :  { %v13_v0 = vstv %s1681_s4 }
   0x2   :  { %14 = vst [vmem:[#allocation3] sm:$0x1] %v13_v0 }
   0x3   :  { %15 = vsyncpa [#allocation5], 0 }
   0x4   :  { %17 = vsyncpa [#allocation5 + $0x1], 0  ;;  %s1340_s29 = smov 0   ;;  %s1342_s30 = smov 0  }
   0x5   :  { %s1344_s9 = smov 0   ;;  %s1346_s10 = smov 0  }
   0x6   :  { %s1348_s11 = smov 0   ;;  %s1350_s12 = smov 0  }
   0x7   :  { %s1352_s13 = smov 0   ;;  %s1354_s14 = smov 0  }
   0x8 LB: > { %1689 = sst [smem:[#allocation7_spill]] %s1275_s13  ;;  %s888_s4 = sadd.s32 4294967295, %s1279_s14   ;;  %s1279_s14 = sphi %s1354_s14, %s23_s14   ;;  %s1275_s13 = sphi %s1352_s13, %s1701_s13   ;;  %s1271_s12 = sphi %s1350_s12, %s1706_s12   ;;  %s1267_s11 = sphi %s1348_s11, %s1699_s11   ;;  %s1263_s10 = sphi %s1346_s10, %s1705_s10   ;;  %s1259_s9 = sphi %s1344_s9, %s1704_s9   ;;  %s1255_s30 = sphi %s1342_s30, %s1703_s30   ;;  %s1251_s29 = sphi %s1340_s29, %s1702_s29  }
   0x9   : > { %s889_s15 = sadd.s32 4294967294, %s1279_s14   ;;  %s32_s16 = sadd.s32 1, %s1271_s12 }
   0xa   : > { %p33_p0 = scmp.ge.s32.totalorder %s32_s16, 4  ;;  %s35_s17 = sadd.s32 1, %s1275_s13 }
   0xb   : > { %p232_p1 = scmp.ne.s32.totalorder %s1259_s9, %s1255_s30  ;;  %p233_p2 = scmp.eq.s32.totalorder %s888_s4, 7 }
   0xc   : > { %s1708_s16 = smov (%p33_p0, %s32_s16), 0  ;;  %s1710_s17 = smov (!%p33_p0, %s35_s17), %s1275_s13 }
   0xd   : > { %1690 = sst [smem:[#allocation8_spill]] %s1708_s16  ;;  %p1389_p3 = por %p233_p2, %p232_p1 }
   0xe   : > { %p238_p4 = scmp.ne.s32.totalorder %s1255_s30, %s1251_s29  ;;  %p37_p5 = scmp.ge.s32.totalorder %s1710_s17, 2 }
   0xf   : > { %p239_p6 = scmp.eq.s32.totalorder %s889_s15, 7  ;;  %p892_p7 = scmp.ge.s32.totalorder %s1279_s14, 1 }
  0x10   : > { %p294_p8 = scmp.lt.s32.totalorder %s1279_s14, 9  ;;  %s1712_s17 = smov (%p37_p5, %s1710_s17), 0 }
  0x11   : > { %1692 = sst [smem:[#allocation9_spill]] %s1712_s17  ;;  %p1399_p9 = por %p239_p6, %p238_p4 }
  0x12   : > { %p295_p10 = pnand %p892_p7, %p294_p8  ;;  %s219_s20 = ssub.s32 %s1275_s13, %s1712_s17 }
  0x13   : > { %s222_s21 = sadd.s32 1, %s1259_s9  ;;  %p220_p11 = scmp.eq.s32.totalorder %s219_s20, 0 }
  0x14   : > { %298 = sbr.rel (%p295_p10) target bundleno = 605 (0x25d), region = 52  ;;  %s332_s23 = sand.u32 (!%p295_p10), 1, %s1255_s30  }
  0x15   : > { %s1407_s22 = scalar_select %p220_p11, %s1259_s9, %s222_s21  }
  0x16   : > { %s893_s24 = sshll.u32 (!%p295_p10), %s1263_s10, 3  ;;  %p335_p12 = scmp.lt.s32.totalorder (!%p295_p10), %s1267_s11, 1 }
  0x17   : > { %p337_p13 = scmp.lt.s32.totalorder (!%p295_p10), %s893_s24, 31  ;;  %s1427_s13 = scalar_lea.vmem (!%p295_p10), [#allocation4], %s332_s23 }
  0x18   : > { %p896_p0 = scmp.ne.s32.totalorder (!%p295_p10), %s1263_s10, 0 }
  0x1b   : > { %s1413_s25 = scalar_select %p335_p12, %s1267_s11, 1 }
  0x1c   : > { %s1714_s24 = smov (!%p337_p13, %s893_s24), 31  ;;  %350 = sbr.rel (%p896_p0) target bundleno = 35 (0x23), region = 56 }
  0x1d   : > { %s894_s26 = sshll.u32 %s1413_s25, 5  ;;  %s346_s4 = scalar_lea.vmem %s1680_s3, %s1413_s25  ;;  %v1281_v1 = vmov (!%p896_p0), 0.0  }
  0x1e   : > { %s340_s15 = sadd.s32 %s894_s26, %s1714_s24  ;;  %351 = vst [vmem:[#allocation2] sm:$0x1] (!%p896_p0), %v1281_v1 }
  0x1f   : > { %s895_s20 = sshll.u32 %s340_s15, 3 }
  0x20   : > { %s1423_s16 = scalar_lea.vmem %s1677_s0, %s895_s20 }
  0x23 PF: > { %v354_v2 = vld [vmem:[%s1423_s16 + $0x10] sm:$0xff]  ;;  %v352_v3 = vld [vmem:[%s1423_s16] sm:$0xff]  ;;  %v1282_v4 = vmov 2   ;;  %v1283_v5 = vmov 0   ;;  %v355_v6 = vld [vmem:[%s1423_s16 + $0x18] sm:$0xff]  ;;  %v1284_v7 = vmov 1   ;;  %v402_v28 = vlaneseq }
  0x24   : > { %1127 = vset.pattern.permute.xlu0 %v1282_v4  ;;  %1123 = vset.pattern.permute.xlu1 %v1283_v5  ;;  %v353_v8 = vld [vmem:[%s1423_s16 + $0x8] sm:$0xff]  ;;  %v356_v10 = vld [vmem:[%s1423_s16 + $0x20] sm:$0xff]  ;;  %v359_v11 = vld [vmem:[%s1423_s16 + $0x38] sm:$0xff]  ;;  %v1285_v12 = vmov 3   ;;  %p906_p1 = scmp.ne.s32.totalorder %s1263_s10, 3 }
  0x25   : > { %374 = vperm.xlu1 %1123, %v354_v2   ;;  %481 = vperm.xlu0 %1127, %v352_v3   ;;  %v357_v9 = vld [vmem:[%s1423_s16 + $0x28] sm:$0xff]  ;;  %v358_v13 = vld [vmem:[%s1423_s16 + $0x30] sm:$0xff]  ;;  %v648_v14 = vld [vmem:[#allocation3] sm:$0x1]  ;;  %v1442_v30 = vshrl.u32 %v402_v28, 7  ;;  %vm1287_vm0 = vmmov (!%p906_p1), 0  }
  0x26   : > { %986 = vpush %v648_v14  ;;  %v360_v33 = vld [vmem:[%s1678_s1] sm:$0xf] }
  0x27   : > { %v404_v32 = vsub.s32 0, %v1442_v30  ;;  %v462_v37 = vsub.s32 1, %v1442_v30  ;;  %v566_v43 = vsub.s32 3, %v1442_v30  ;;  %v1463_v44 = vld [vmem:[%s1679_s2] ss:$0 sm:$0xff]  ;;  %v514_v45 = vsub.s32 2, %v1442_v30 }
  0x29   : > { %1124 = vset.pattern.permute.xlu1 %v1284_v7  ;;  %493 = vperm.xlu0 %1127, %v355_v6   ;;  %v1450_v36 = vrot.slane %v360_v33, %v404_v32  ;;  %v1457_v42 = vrot.slane %v360_v33, %v462_v37  ;;  %v1470_v51 = vrot.slane %v360_v33, %v566_v43 }
  0x2a   : > { %429 = vperm.xlu1 %1124, %v352_v3   ;;  %v1473_v53 = vrot.slane %v360_v33, %v514_v45 }
  0x2d   : > { %1134 = vset.pattern.permute.xlu0 %v1284_v7 }
  0x2e   : > { %433 = vperm.xlu0 %1134, %v353_v8   ;;  %1125 = vset.pattern.permute.xlu1 %v1283_v5 }
  0x2f   : > { %379 = vperm.xlu1 %1125, %v355_v6  }
  0x32   : > { %441 = vperm.xlu0 %1134, %v355_v6  }
  0x33   : > { %1126 = vset.pattern.permute.xlu1 %v1284_v7 }
  0x34   : > { %437 = vperm.xlu1 %1126, %v354_v2  }
  0x36   : > { %449 = vperm.xlu0 %1134, %v357_v9  }
  0x38   : > { %1128 = vset.pattern.permute.xlu1 %v1282_v4 }
  0x39   : > { %485 = vperm.xlu1 %1128, %v353_v8  }
  0x3a   : > { %1137 = vset.pattern.permute.xlu0 %v1283_v5 }
  0x3b   : > { %364 = vperm.xlu0 %1137, %v352_v3  }
  0x3d   : > { %1129 = vset.pattern.permute.xlu1 %v1283_v5 }
  0x3e   : > { %384 = vperm.xlu1 %1129, %v356_v10  }
  0x3f   : > { %369 = vperm.xlu0 %1137, %v353_v8  }
  0x42   : > { %1130 = vset.pattern.permute.xlu1 %v1282_v4 }
  0x43   : > { %399 = vperm.xlu0 %1137, %v359_v11   ;;  %489 = vperm.xlu1 %1130, %v354_v2  }
  0x47   : > { %1140 = vset.pattern.permute.xlu0 %v1285_v12  ;;  %1131 = vset.pattern.permute.xlu1 %v1285_v12 }
  0x48   : > { %537 = vperm.xlu0 %1140, %v353_v8   ;;  %533 = vperm.xlu1 %1131, %v352_v3  }
  0x4c   : > { %1132 = vset.pattern.permute.xlu1 %v1283_v5  ;;  %549 = vperm.xlu0 %1140, %v356_v10  }
  0x4d   : > { %389 = vperm.xlu1 %1132, %v357_v9  }
  0x50   : > { %553 = vperm.xlu0 %1140, %v357_v9  }
  0x51   : > { %1133 = vset.pattern.permute.xlu1 %v1284_v7 }
  0x52   : > { %445 = vperm.xlu1 %1133, %v356_v10  }
  0x54   : > { %557 = vperm.xlu0 %1140, %v358_v13  }
  0x56   : > { %1135 = vset.pattern.permute.xlu1 %v1285_v12 }
  0x57   : > { %541 = vperm.xlu1 %1135, %v354_v2   ;;  %s1438_s16 = spop %986 }
  0x5b   : > { %1136 = vset.pattern.permute.xlu1 %v1283_v5 }
  0x5c   : > { %394 = vperm.xlu1 %1136, %v358_v13  }
  0x60   : > { %1138 = vset.pattern.permute.xlu1 %v1282_v4 }
  0x61   : > { %497 = vperm.xlu1 %1138, %v356_v10  }
  0x65   : > { %1139 = vset.pattern.permute.xlu1 %v1285_v12 }
  0x66   : > { %545 = vperm.xlu1 %1139, %v355_v6  }
  0x6a   : > { %1141 = vset.pattern.permute.xlu1 %v1284_v7 }
  0x6b   : > { %453 = vperm.xlu1 %1141, %v358_v13  }
  0x6f   : > { %1142 = vset.pattern.permute.xlu1 %v1282_v4 }
  0x70   : > { %501 = vperm.xlu1 %1142, %v357_v9  }
  0x74   : > { %1143 = vset.pattern.permute.xlu1 %v1284_v7 }
  0x75   : > { %457 = vperm.xlu1 %1143, %v359_v11  }
  0x79   : > { %1144 = vset.pattern.permute.xlu1 %v1282_v4 }
  0x7a   : > { %505 = vperm.xlu1 %1144, %v358_v13  }
  0x7e   : > { %509 = vperm.xlu1 %1144, %v359_v11  }
  0x82   : > { %1145 = vset.pattern.permute.xlu1 %v1285_v12 }
  0x83   : > { %561 = vperm.xlu1 %1145, %v359_v11  }
  0xa4   : > { %v375_v15 = vpop.permute.xlu1 %374  ;;  %v482_v17 = vpop.permute.xlu0 %481 }
  0xa5   : > { %v408_v52 = vmul.f32 %v1450_v36, %v375_v15  ;;  %v516_v59 = vmul.f32 %v1473_v53, %v482_v17 }
  0xa7   : > { %v422_v1 = vadd.f32 %v1463_v44, %v408_v52 }
  0xa8   : > { %v494_v19 = vpop.permute.xlu0 %493 }
  0xa9   : > { %v430_v16 = vpop.permute.xlu1 %429  ;;  %v519_v4 = vmul.f32 %v1473_v53, %v494_v19 }
  0xaa   : > { %v464_v54 = vmul.f32 %v1457_v42, %v430_v16 }
  0xad   : > { %v434_v22 = vpop.permute.xlu0 %433 }
  0xae   : > { %v380_v18 = vpop.permute.xlu1 %379  ;;  %v465_v46 = vmul.f32 %v1457_v42, %v434_v22 }
  0xaf   : > { %v409_v47 = vmul.f32 %v1450_v36, %v380_v18 }
  0xb1   : > { %v442_v24 = vpop.permute.xlu0 %441  ;;  %v423_v56 = vadd.f32 %v1463_v44, %v409_v47 }
  0xb2   : > { %v467_v57 = vmul.f32 %v1457_v42, %v442_v24 }
  0xb3   : > { %v438_v20 = vpop.permute.xlu1 %437 }
  0xb4   : > { %v466_v60 = vmul.f32 %v1457_v42, %v438_v20  ;;  %v475_v5 = vadd.f32 %v467_v57, %v423_v56 }
  0xb5   : > { %v1440_v26 = vpop.permute.xlu0 %449 }
  0xb6   : > { %v474_v8 = vadd.f32 %v466_v60, %v422_v1  ;;  %v527_v18 = vadd.f32 %v519_v4, %v475_v5 }
  0xb8   : > { %v486_v21 = vpop.permute.xlu1 %485 }
  0xb9   : > { %v517_v62 = vmul.f32 %v1473_v53, %v486_v21 }
  0xba   : > { %v365_v29 = vpop.permute.xlu0 %364 }
  0xbb   : > { %v406_v40 = vmul.f32 %v1450_v36, %v365_v29 }
  0xbd   : > { %v385_v23 = vpop.permute.xlu1 %384  ;;  %v420_v49 = vadd.f32 %v1463_v44, %v406_v40 }
  0xbe   : > { %v370_v34 = vpop.permute.xlu0 %369  ;;  %v410_v6 = vmul.f32 %v1450_v36, %v385_v23 }
  0xbf   : > { %v407_v38 = vmul.f32 %v1450_v36, %v370_v34  ;;  %v472_v61 = vadd.f32 %v464_v54, %v420_v49 }
  0xc0   : > { %v424_v16 = vadd.f32 %v1463_v44, %v410_v6 }
  0xc1   : > { %v421_v48 = vadd.f32 %v1463_v44, %v407_v38  ;;  %v524_v9 = vadd.f32 %v516_v59, %v472_v61 }
  0xc2   : > { %v490_v25 = vpop.permute.xlu1 %489  ;;  %v1455_v41 = vpop.permute.xlu0 %399 }
  0xc3   : > { %v473_v58 = vadd.f32 %v465_v46, %v421_v48  ;;  %v518_v2 = vmul.f32 %v1473_v53, %v490_v25 }
  0xc5   : > { %v525_v7 = vadd.f32 %v517_v62, %v473_v58  ;;  %v526_v13 = vadd.f32 %v518_v2, %v474_v8  ;;  %v413_v2 = vmul.f32 %v1450_v36, %v1455_v41 }
  0xc7   : > { %v534_v27 = vpop.permute.xlu1 %533  ;;  %v538_v55 = vpop.permute.xlu0 %537 }
  0xc8   : > { %v569_v63 = vmul.f32 %v1470_v51, %v538_v55  ;;  %v568_v3 = vmul.f32 %v1470_v51, %v534_v27 }
  0xca   : > { %v1488_v11 = vadd.f32 %v569_v63, %v525_v7  ;;  %v1491_v14 = vadd.f32 %v568_v3, %v524_v9 }
  0xcb   : > { %v550_v21 = vpop.permute.xlu0 %549 }
  0xcc   : > { %v390_v31 = vpop.permute.xlu1 %389  ;;  %v899_v22 = vmul.f32 -1.442695, %v1488_v11  ;;  %v898_v27 = vmul.f32 -1.442695, %v1491_v14  ;;  %v572_v29 = vmul.f32 %v1470_v51, %v550_v21 }
  0xcd   : > { %v411_v23 = vmul.f32 %v1450_v36, %v390_v31 }
  0xce   : > { %1146 = vpow2.f32 %v899_v22 }
  0xcf   : > { %v425_v37 = vadd.f32 %v1463_v44, %v411_v23  ;;  %1148 = vpow2.f32 %v898_v27  ;;  %v554_v31 = vpop.permute.xlu0 %553 }
  0xd0   : > { %v573_v46 = vmul.f32 %v1470_v51, %v554_v31 }
  0xd1   : > { %v446_v35 = vpop.permute.xlu1 %445 }
  0xd2   : > { %v468_v12 = vmul.f32 %v1457_v42, %v446_v35  ;;  %v469_v35 = vmul.f32 %v1457_v42, %v1440_v26 }
  0xd3   : > { %v558_v61 = vpop.permute.xlu0 %557 }
  0xd4   : > { %v476_v24 = vadd.f32 %v468_v12, %v424_v16  ;;  %v477_v43 = vadd.f32 %v469_v35, %v425_v37  ;;  %v574_v4 = vmul.f32 %v1470_v51, %v558_v61 }
  0xd6   : > { %v542_v39 = vpop.permute.xlu1 %541 }
  0xd7   : > { %v570_v10 = vmul.f32 %v1470_v51, %v542_v39 }
  0xd8   : > { %v1147_v54 = vpop.eup %1146 }
  0xd9   : > { %v1496_v20 = vadd.f32 %v570_v10, %v526_v13  ;;  %v1149_v57 = vpop.eup %1148  ;;  %v609_v60 = vadd.f32 1.0, %v1147_v54  ;;  %v427_v10 = vadd.f32 %v1463_v44, %v413_v2 }
  0xdb   : > { %v395_v50 = vpop.permute.xlu1 %394  ;;  %v900_v34 = vmul.f32 -1.442695, %v1496_v20 }
  0xdc   : > { %v412_v48 = vmul.f32 %v1450_v36, %v395_v50 }
  0xdd   : > { %1150 = vpow2.f32 %v900_v34 }
  0xde   : > { %v426_v58 = vadd.f32 %v1463_v44, %v412_v48 }
  0xe0   : > { %v498_v0 = vpop.permute.xlu1 %497 }
  0xe1   : > { %v520_v17 = vmul.f32 %v1473_v53, %v498_v0  ;;  %v608_v0 = vadd.f32 1.0, %v1149_v57 }
  0xe3   : > { %v528_v28 = vadd.f32 %v520_v17, %v476_v24 }
  0xe5   : > { %v546_v15 = vpop.permute.xlu1 %545  ;;  %v1509_v39 = vadd.f32 %v572_v29, %v528_v28 }
  0xe6   : > { %v571_v19 = vmul.f32 %v1470_v51, %v546_v15 }
  0xe7   : > { %v902_v47 = vmul.f32 -1.442695, %v1509_v39  ;;  %v1151_v59 = vpop.eup %1150 }
  0xe8   : > { %v1500_v25 = vadd.f32 %v571_v19, %v527_v18  ;;  %v610_v3 = vadd.f32 1.0, %v1151_v59 }
  0xea   : > { %v454_v33 = vpop.permute.xlu1 %453  ;;  %v901_v38 = vmul.f32 -1.442695, %v1500_v25 }
  0xeb   : > { %v470_v55 = vmul.f32 %v1457_v42, %v454_v33 }
  0xec   : > { %1152 = vpow2.f32 %v901_v38 }
  0xed   : > { %1154 = vpow2.f32 %v902_v47  ;;  %v478_v50 = vadd.f32 %v470_v55, %v426_v58 }
  0xef   : > { %v502_v40 = vpop.permute.xlu1 %501 }
  0xf0   : > { %v521_v45 = vmul.f32 %v1473_v53, %v502_v40 }
  0xf2   : > { %v529_v26 = vadd.f32 %v521_v45, %v477_v43 }
  0xf4   : > { %v1515_v49 = vadd.f32 %v573_v46, %v529_v26  ;;  %v458_v52 = vpop.permute.xlu1 %457 }
  0xf5   : > { %v471_v7 = vmul.f32 %v1457_v42, %v458_v52 }
  0xf6   : > { %v903_v56 = vmul.f32 -1.442695, %v1515_v49  ;;  %v1153_v63 = vpop.eup %1152 }
  0xf7   : > { %v611_v6 = vadd.f32 1.0, %v1153_v63  ;;  %v1155_v13 = vpop.eup %1154  ;;  %v479_v36 = vadd.f32 %v471_v7, %v427_v10 }
  0xf8   : > { %1156 = vpow2.f32 %v903_v56  ;;  %v612_v17 = vadd.f32 1.0, %v1155_v13 }
  0xf9   : > { %v506_v62 = vpop.permute.xlu1 %505  ;;  %1158 = vrcp.f32 %v609_v60 }
  0xfa   : > { %v522_v1 = vmul.f32 %v1473_v53, %v506_v62  ;;  %1160 = vrcp.f32 %v608_v0 }
  0xfb   : > { %1162 = vrcp.f32 %v610_v3 }
  0xfc   : > { %v530_v5 = vadd.f32 %v522_v1, %v478_v50  ;;  %1164 = vrcp.f32 %v611_v6 }
  0xfd   : > { %v510_v8 = vpop.permute.xlu1 %509 }
  0xfe   : > { %v582_v9 = vadd.f32 %v574_v4, %v530_v5  ;;  %v523_v12 = vmul.f32 %v1473_v53, %v510_v8 }
 0x100   : > { %v904_v15 = vmul.f32 -1.442695, %v582_v9  ;;  %v531_v18 = vadd.f32 %v523_v12, %v479_v36 }
 0x102   : > { %v1157_v41 = vpop.eup %1156  ;;  %1166 = vpow2.f32 %v904_v15  ;;  %v562_v16 = vpop.permute.xlu1 %561 }
 0x103   : > { %v575_v19 = vmul.f32 %v1470_v51, %v562_v16  ;;  %v613_v42 = vadd.f32 1.0, %v1157_v41  ;;  %v1159_v22 = vpop.eup %1158  ;;  %1168 = vrcp.f32 %v612_v17  ;;  %v666_v17 = vld [vmem:[#allocation2] sm:$0x1] }
 0x104   : > { %v1161_v44 = vpop.eup %1160  ;;  %v633_v27 = vmul.f32 %v1159_v22, %v1488_v11  ;;  %v694_v22 = vld [vmem:[%s1682_s5 + $0x8] sm:$0xff] (!%p906_p1) }
 0x105   : > { %v583_v21 = vadd.f32 %v575_v19, %v531_v18  ;;  %1170 = vrcp.f32 %v613_v42  ;;  %v1163_v53 = vpop.eup %1162  ;;  %v632_v28 = vmul.f32 %v1161_v44, %v1491_v14  ;;  %v688_v42 = vstv (!%p906_p1), %s1438_s16 }
 0x106   : > { %v1165_v24 = vpop.eup %1164  ;;  %v634_v33 = vmul.f32 %v1163_v53, %v1496_v20  ;;  %v641_v35 = vmax.f32 %v633_v27, 1e-06  ;;  %v1286_v44 = vmov (!%p906_p1), 0.0|0.0   ;;  %v1288_v27 = vmov (!%p906_p1), 0.0  }
 0x107   : > { %v905_v23 = vmul.f32 -1.442695, %v583_v21  ;;  %v640_v51 = vmax.f32 %v632_v28, 1e-06  ;;  %v635_v37 = vmul.f32 %v1165_v24, %v1500_v25  ;;  %962 = vmatprep.subr.bf16.mxu0 (!%p906_p1), %v1286_v44  ;;  %v696_v24 = vld [vmem:[%s1682_s5 + $0x18] sm:$0xff] (!%p906_p1)  ;;  %959 = vmatprep.mubr.msk.f32.mxu0 (!%p906_p1), %vm1287_vm0, %v1288_v27  ;;  %v1289_v28 = vmov (!%p906_p1), 0  }
 0x108   : > { %v642_v31 = vmax.f32 %v634_v33, 1e-06  ;;  %v651_v45 = vmul.f32 %v641_v35, %v641_v35  ;;  %1178 = vset.pattern.permute.xlu0 (!%p906_p1), %v1289_v28  ;;  %v697_v33 = vld [vmem:[%s1682_s5 + $0x20] sm:$0xff] (!%p906_p1) }
 0x109   : > { %1172 = vpow2.f32 %v905_v23  ;;  %v650_v46 = vmul.f32 %v640_v51, %v640_v51  ;;  %v643_v47 = vmax.f32 %v635_v37, 1e-06  ;;  %v695_v23 = vld [vmem:[%s1682_s5 + $0x10] sm:$0xff] (!%p906_p1) }
 0x10a   : > { %v652_v11 = vmul.f32 %v642_v31, %v642_v31  ;;  %v659_v20 = vmul.f32 %v651_v45, %v641_v35  ;;  %v709_v35 = vld [vmem:[%s346_s4] sm:$0x1] (!%p906_p1)  ;;  %v699_v37 = vld [vmem:[%s1682_s5 + $0x30] sm:$0xff] (!%p906_p1)  ;;  %v702_v45 = vld [vmem:[%s1682_s5 + $0x48] sm:$0xff] (!%p906_p1) }
 0x10b   : > { %v658_v52 = vmul.f32 %v650_v46, %v640_v51  ;;  %v653_v54 = vmul.f32 %v643_v47, %v643_v47  ;;  %713 = vperm.xlu0 (!%p906_p1), %1178, %v709_v35  }
 0x10c   : > { %v1167_v29 = vpop.eup %1166  ;;  %v660_v25 = vmul.f32 %v652_v11, %v642_v31 }
 0x10d   : > { %v614_v34 = vadd.f32 1.0, %v1167_v29  ;;  %v1169_v38 = vpop.eup %1168  ;;  %v667_v59 = vadd.f32 %v659_v20, %v658_v52  ;;  %v661_v60 = vmul.f32 %v653_v54, %v643_v47  ;;  %v966_v29 = vpack.c.bf16 (!%p906_p1), %v696_v24, %v695_v23  ;;  %v703_v47 = vld [vmem:[%s1682_s5 + $0x50] sm:$0xff] (!%p906_p1)  ;;  %v708_v54 = vld [vmem:[%s1682_s5 + $0x78] sm:$0xff] (!%p906_p1) }
 0x10e   : > { %v636_v14 = vmul.f32 %v1169_v38, %v1509_v39  ;;  %v700_v38 = vld [vmem:[%s1682_s5 + $0x38] sm:$0xff] (!%p906_p1)  ;;  %v707_v52 = vld [vmem:[%s1682_s5 + $0x70] sm:$0xff] (!%p906_p1) }
 0x10f   : > { %1174 = vrcp.f32 %v614_v34  ;;  %v1171_v40 = vpop.eup %1170  ;;  %v668_v62 = vadd.f32 %v667_v59, %v660_v25  ;;  %v698_v34 = vld [vmem:[%s1682_s5 + $0x28] sm:$0xff] (!%p906_p1) }
 0x110   : > { %v637_v48 = vmul.f32 %v1171_v40, %v1515_v49  ;;  %v644_v56 = vmax.f32 %v636_v14, 1e-06  ;;  %v969_v51 = vpack.c.bf16 (!%p906_p1), %v698_v34, %v697_v33  ;;  %v972_v40 = vpack.c.bf16 (!%p906_p1), %v700_v38, %v699_v37  ;;  %v705_v14 = vld [vmem:[%s1682_s5 + $0x60] sm:$0xff] (!%p906_p1) }
 0x111   : > { %v669_v50 = vadd.f32 %v668_v62, %v661_v60 }
 0x112   : > { %v645_v57 = vmax.f32 %v637_v48, 1e-06  ;;  %v654_v63 = vmul.f32 %v644_v56, %v644_v56  ;;  %v706_v48 = vld [vmem:[%s1682_s5 + $0x68] sm:$0xff] (!%p906_p1) }
 0x113   : > { %v1173_v43 = vpop.eup %1172  ;;  %v981_v20 = vpack.c.bf16 (!%p906_p1), %v706_v48, %v705_v14 }
 0x114   : > { %v615_v26 = vadd.f32 1.0, %v1173_v43  ;;  %v655_v0 = vmul.f32 %v645_v57, %v645_v57  ;;  %v662_v2 = vmul.f32 %v654_v63, %v644_v56  ;;  %v701_v43 = vld [vmem:[%s1682_s5 + $0x40] sm:$0xff] (!%p906_p1) }
 0x115   : > { %v975_v46 = vpack.c.bf16 (!%p906_p1), %v702_v45, %v701_v43 }
 0x116   : > { %1176 = vrcp.f32 %v615_v26  ;;  %v663_v49 = vmul.f32 %v655_v0, %v645_v57  ;;  %v670_v4 = vadd.f32 %v669_v50, %v662_v2  ;;  %v704_v26 = vld [vmem:[%s1682_s5 + $0x58] sm:$0xff] (!%p906_p1)  ;;  %v1290_v2 = vmov (!%p906_p1), 2139095040  }
 0x117   : > { %1179 = vrcp.f32 (!%p906_p1), %v688_v42  ;;  %v978_v11 = vpack.c.bf16 (!%p906_p1), %v704_v26, %v703_v47 }
 0x118   : > { %v671_v7 = vadd.f32 %v670_v4, %v663_v49 }
 0x119   : > { %v1175_v55 = vpop.eup %1174 }
 0x11a   : > { %v638_v58 = vmul.f32 %v1175_v55, %v582_v9  ;;  %v984_v55 = vpack.c.bf16 (!%p906_p1), %v708_v54, %v707_v52 }
 0x11c   : > { %v646_v61 = vmax.f32 %v638_v58, 1e-06 }
 0x11e   : > { %v656_v1 = vmul.f32 %v646_v61, %v646_v61 }
 0x120   : > { %v1177_v39 = vpop.eup %1176  ;;  %v664_v5 = vmul.f32 %v656_v1, %v646_v61 }
 0x121   : > { %v639_v3 = vmul.f32 %v1177_v39, %v583_v21  ;;  %v693_v21 = vld [vmem:[%s1682_s5] sm:$0xff] (!%p906_p1)  ;;  %v1180_v31 = vpop.eup (!%p906_p1), %1179 }
 0x122   : > { %v672_v10 = vadd.f32 %v671_v7, %v664_v5  ;;  %v963_v53 = vpack.c.bf16 (!%p906_p1), %v694_v22, %v693_v21  ;;  %988 = vpush (!%p906_p1), %v1180_v31  ;;  %v710_v21 = vld [vmem:[%s1683_s6] sm:$0x1] (!%p906_p1) }
 0x123   : > { %v647_v6 = vmax.f32 %v639_v3, 1e-06 }
 0x124   : > { %964 = vmatpush3.bf16.msra.mxu0 (!%p906_p1), %v963_v53 }
 0x125   : > { %v657_v8 = vmul.f32 %v647_v6, %v647_v6  ;;  %965 = vmatprep.subr.bf16.mxu0 (!%p906_p1), %v1286_v44 }
 0x127   : > { %v665_v12 = vmul.f32 %v657_v8, %v647_v6 }
 0x128   : > { %967 = vmatpush3.bf16.msra.mxu0 (!%p906_p1), %v966_v29 }
 0x129   : > { %v673_v9 = vadd.f32 %v672_v10, %v665_v12  ;;  %968 = vmatprep.subr.bf16.mxu0 (!%p906_p1), %v1286_v44 }
 0x12b   : > { %v674_v13 = vrot.slane %v673_v9, 4 }
 0x12c   : > { %970 = vmatpush3.bf16.msra.mxu0 (!%p906_p1), %v969_v51 }
 0x12d   : > { %v675_v15 = vadd.f32 %v674_v13, %v673_v9  ;;  %971 = vmatprep.subr.bf16.mxu0 (!%p906_p1), %v1286_v44 }
 0x12f   : > { %v676_v36 = vrot.slane %v675_v15, 2 }
 0x130   : > { %973 = vmatpush3.bf16.msra.mxu0 (!%p906_p1), %v972_v40 }
 0x131   : > { %v677_v41 = vadd.f32 %v676_v36, %v675_v15  ;;  %974 = vmatprep.subr.bf16.mxu0 (!%p906_p1), %v1286_v44 }
 0x133   : > { %v678_v16 = vrot.slane %v677_v41, 1  ;;  %685 = sbr.rel (%p906_p1) target bundleno = 581 (0x245), region = 60 }
 0x134   : > { %976 = vmatpush3.bf16.msra.mxu0 (!%p906_p1), %v975_v46 }
 0x135   : > { %v679_v18 = vadd.f32 %v678_v16, %v677_v41  ;;  %977 = vmatprep.subr.bf16.mxu0 (!%p906_p1), %v1286_v44 }
 0x137   : > { %v680_v19 = vadd.f32 %v679_v18, %v666_v17 }
 0x138   : > { %979 = vmatpush3.bf16.msra.mxu0 (!%p906_p1), %v978_v11 }
 0x139   : > { %681 = vst [vmem:[#allocation2] sm:$0x1] %v680_v19  ;;  %980 = vmatprep.subr.bf16.mxu0 (!%p906_p1), %v1286_v44 }
 0x13c   : > { %982 = vmatpush3.bf16.msra.mxu0 %v981_v20 }
 0x13d   : > { %983 = vmatprep.subr.bf16.mxu0 %v1286_v44  ;;  %v791_v44 = vld [vmem:[%s1684_s7] sm:$0x1] }
 0x140   : > { %985 = vmatpush3.bf16.msra.mxu0 %v984_v55  ;;  %v686_v25 = vld [vmem:[#allocation2] sm:$0x1] }
 0x141   : > { %v687_v56 = vmul.f32 0.00390625, %v686_v25 }
 0x143   : > { %v990_v57 = vand.u32 2147483647, %v687_v56  ;;  %vm1011_vm4 = vcmp.eq.f32.partialorder %v687_v56, 0  ;;  %vm1688_vm8 = vcmp.lt.f32.partialorder %v687_v56, 0 }
 0x145   : > { %1181 = vlog2.f32 %v990_v57  ;;  %vm1014_vm5 = vcmp.gt.f32.partialorder %v990_v57, 1065353216 }
 0x14f   : > { %v1182_v58 = vpop.eup %1181 }
 0x153   : > { %s989_s28 = spop %988 }
 0x154   : > { %v691_v59 = vstv %s989_s28 }
 0x155   : > { %v992_v60 = vmul.f32 %v1182_v58, %v691_v59  ;;  %v994_v61 = vand.u32 2147483647, %v691_v59  ;;  %v999_v62 = vtrunc.f32 %v691_v59  ;;  %vm998_vm2 = vcmp.lt.f32.partialorder %v691_v59, 0 }
 0x156   : > { %vm1593_vm7 = vmand %vm998_vm2, %vm1011_vm4  ;;  %v1030_v49 = vsel %vm998_vm2, 0, %v1290_v2  ;;  %v1018_v5 = vsel %vm998_vm2, 2139095040, %v1289_v28 }
 0x157   : > { %1183 = vpow2.f32 %v992_v60  ;;  %vm995_vm1 = vcmp.eq.f32.partialorder %v994_v61, 2139095040  ;;  %v1003_v63 = vtrunc.f32 %v994_v61  ;;  %vm1000_vm3 = vcmp.ne.f32.partialorder %v691_v59, %v999_v62  ;;  %vm1598_vm9 = vmxor %vm998_vm2, %vm1014_vm5 }
 0x158   : > { %vm1001_vm6 = vmor %vm1000_vm3, %vm995_vm1  ;;  %vm1002_vm14 = vcmp.lt.f32.partialorder %v994_v61, 1266679808  ;;  %vm1013_vm3 = vcmp.lt.s32.totalorder %v687_v56, 0  ;;  %v1031_v6 = vxor.u32 2147483648, %v1030_v49  ;;  %vm1027_vm5 = vcmp.eq.f32.partialorder %v687_v56, 3212836864 }
 0x159   : > { %v1004_v0 = vcvt.f32.s32 %v1003_v63  ;;  %vm1007_vm11 = vmneg %vm1001_vm6 }
 0x15a   : > { %vm1016_vm13 = vmand %vm1688_vm8, %vm1001_vm6  ;;  %vm1015_vm6 = vcmp.eq.f32.partialorder %v990_v57, 2139095040  ;;  %vm1036_vm8 = vcmp.ne.f32.partialorder %v691_v59, %v691_v59 }
 0x15b   : > { %v1005_v50 = vand.u32 1, %v1004_v0  ;;  %vm1025_vm15 = vmor %vm1593_vm7, %vm1598_vm9  ;;  %vm996_vm7 = vcmp.eq.f32.partialorder %v691_v59, 0  ;;  %vm1012_vm9 = vcmp.eq.f32.partialorder %v687_v56, 1065353216 }
 0x15c   : > { %v1026_v8 = vsel %vm1025_vm15, 2139095040, %v1289_v28 }
 0x15d   : > { %vm1006_vm10 = vcmp.eq.s32.totalorder %v1005_v50, 1  ;;  %v1028_v13 = vsel %vm1027_vm5, 1065353216, %v1026_v8 }
 0x15e   : > { %vm1008_vm12 = vmand %vm1006_vm10, %vm1007_vm11  ;;  %vm1035_vm11 = vcmp.ne.f32.partialorder %v687_v56, %v687_v56 }
 0x15f   : > { %vm1009_vm0 = vmand %vm1002_vm14, %vm1008_vm12  ;;  %vm1698_vm12 = vcmp.lt.f32.partialorder %v687_v56, 0 }
 0x160   : > { %v1032_v12 = vsel %vm1009_vm0, %v1031_v6, %v1030_v49  ;;  %vm1020_vm10 = vmand %vm1013_vm3, %vm1009_vm0 }
 0x161   : > { %v1184_v3 = vpop.eup %1183  ;;  %v1033_v36 = vsel %vm1698_vm12, %v1032_v12, %v1030_v49  ;;  %vm1037_vm2 = vmor %vm1035_vm11, %vm1036_vm8 }
 0x162   : > { %v1017_v4 = vsel %vm1016_vm13, 2143289344, %v1184_v3  ;;  %vm997_vm13 = vcmp.eq.f32.partialorder %v691_v59, 1065353216 }
 0x163   : > { %v1019_v7 = vsel %vm1011_vm4, %v1018_v5, %v1017_v4  ;;  %vm1039_vm4 = vmor %vm1012_vm9, %vm996_vm7 }
 0x164   : > { %v1021_v10 = vxor.u32 2147483648, %v1019_v7 }
 0x166   : > { %v1022_v9 = vsel %vm1020_vm10, %v1021_v10, %v1019_v7 }
 0x167   : > { %v1029_v15 = vsel %vm995_vm1, %v1028_v13, %v1022_v9 }
 0x168   : > { %v1034_v41 = vsel %vm1015_vm6, %v1033_v36, %v1029_v15 }
 0x169   : > { %v1038_v16 = vsel %vm1037_vm2, 2143289344, %v1034_v41 }
 0x16a   : > { %v1040_v17 = vsel %vm1039_vm4, 1065353216, %v1038_v16 }
 0x16b   : > { %v1041_v18 = vsel %vm997_vm13, %v687_v56, %v1040_v17 }
 0x16c   : > { %960 = vmatmul.mubr.f32.vlgmr.msra.gmra.mrb[0].mxu0 %v1041_v18 }
 0x18a   : > { %v714_v19 = vpop.permute.xlu0 %713 }
 0x18b   : > { %v719_v42 = vrot.slane %v714_v19, %v404_v32 }
 0x18d   : > { %v720_v22 = vmul.f32 %v719_v42, %v710_v21 }
 0x23f   : > { %v787_v23 = vpop.f32.mrb[0].mxu0 }
 0x240   : > { %v788_v53 = vadd.f32 %v787_v23, %v720_v22  ;;  %v961_v24 = vpop.f32.mrb[1].mxu0 }
 0x242   : > { %v792_v27 = vadd.f32 %v791_v44, %v788_v53 }
 0x244   : > { %793 = vst [vmem:[%s1427_s13] sm:$0x1] %v792_v27 }
 0x245 PF: > { %s907_s24 = sshll.u32 %s1267_s11, 4  ;;  %s807_s25 = sshll.u32 %s1427_s13, 4  ;;  %s808_s25 = int_to_ptr.vmem [resolvable:$true] %s807_s25 }
 0x246   : > { %s1627_s16 = scalar_lea.hbm %s1685_s8, %s907_s24  ;;  %s795_s4 = scalar_lea.sflag [#allocation5], %s332_s23 }
 0x247   : > { %s1185_s27 = scalar_lea.vmem %s808_s25, 16  ;;  %s1291_s28 = smov [#allocation4]  }
 0x248   : > { %p1186_p2 = scmp.ne.s32.totalorder %s808_s25, %s1185_s27  ;;  %s1189_s15 = sshll.u32 %s1291_s28, 4  ;;  %s1190_s15 = int_to_ptr.vmem [resolvable:$false] %s1189_s15 }
 0x249   : > { %s1191_s20 = scalar_lea.vmem %s1190_s15, 32  ;;  %p1192_p6 = scmp.lt.s32.totalorder %s808_s25, %s1190_s15 }
 0x24a   : > { %p1187_p4 = pnand %p1186_p2, %p1389_p3  ;;  %p1193_p7 = scmp.lt.s32.totalorder %s1191_s20, %s1185_s27 }
 0x24c   : > { %p1188_p5 = pneg %p1187_p4  ;;  %p1194_p8 = por %p1193_p7, %p1192_p6 }
 0x24e   : > { %p1195_p10 = pnand %p1194_p8, %p1188_p5 }
 0x250   : > { %1198 = shalt.err (!%p1195_p10)
}
 0x251   : > { %s1199_s11 = scalar_lea.hbm %s1627_s16, 16  ;;  %s1203_s21 = scalar_lea.hbm %s1685_s8, 32 }
 0x252   : > { %p1200_p11 = scmp.ne.s32.totalorder %s1627_s16, %s1199_s11  ;;  %p1204_p0 = scmp.lt.u32.totalorder %s1627_s16, %s1685_s8 }
 0x253   : > { %p1205_p1 = scmp.lt.u32.totalorder %s1203_s21, %s1199_s11  ;;  %p1207_p4 = scmp.lt.u32.totalorder %s1199_s11, %s1627_s16 }
 0x254   : > { %p1201_p12 = pnand %p1200_p11, %p1389_p3 }
 0x255   : > { %p1206_p2 = por %p1205_p1, %p1204_p0 }
 0x256   : > { %p1202_p13 = pneg %p1201_p12 }
 0x257   : > { %p1208_p5 = por %p1207_p4, %p1206_p2 }
 0x259   : > { %p1209_p6 = pnand %p1208_p5, %p1202_p13 }
 0x25b   : > { %1212 = shalt.err (!%p1209_p6)
}
 0x25c   : > { %1042 = dma.vmem_to_hbm [thread:$0]  (%p1389_p3), %s808_s25, 16, %s1627_s16, %s795_s4  }
 0x25d PF: > { %p1048_p7 = scmp.ge.s32.totalorder %s1279_s14, 2  ;;  %s819_s10 = sand.u32 1, %s1251_s29  }
 0x25e   : > { %s820_s26 = scalar_lea.sflag [#allocation5], %s819_s10 }
 0x25f   : > { %p1045_p8 = pnand %p1048_p7, %p1399_p9 }
 0x261   : > { %1246 = dma.done.wait (!%p1045_p8), %s820_s26, 16  }
 0x262   : > { %1248 = vsyncadd (!%p1045_p8), %s820_s26, 4294967280  ;;  %s23_s14 = sadd.s32 1, %s1279_s14   ;;  %s1699_s11 = sld [smem:[#allocation7_spill]] }
 0x263   : > { %p20_p10 = scmp.ge.s32.totalorder %s23_s14, 10   ;;  %s1700_s18 = sld [smem:[#allocation8_spill]] }
 0x264   : > { %s1701_s13 = sld [smem:[#allocation9_spill]]  ;;  %s1702_s29 = smov %s1255_s30 }
 0x265   : > { %s1703_s30 = smov %s1259_s9  ;;  %s1704_s9 = smov %s1407_s22 }
 0x266   : > { %s1705_s10 = smov %s1271_s12  ;;  %22 = sbr.rel (!%p20_p10) target bundleno = 8 (0x8), region = 98 }
 0x269   : > { %s1706_s12 = smov %s1700_s18 }
 0x26d   :  { %824 = vsyncpa [#allocation5], 1 }
 0x26e   :  { %826 = vsyncpa [#allocation5 + $0x1], 1 }

</bundles_post_ra>
